<compile_context>
chip_gen: v7x
topology: tpu7x:2x2x1
jax: 0.10.0
libtpu: 0.0.40
codegen_flags: <defaults>
</compile_context>

<pallas_src>
import math
import numpy as np
import jax
import jax.numpy as jnp
from jax.experimental import pallas as pl
from jax.experimental.pallas import tpu as pltpu


def _round_up(x, m):
    return ((x + m - 1) // m) * m


def _cdiv(a, b):
    return (a + b - 1) // b


def _vmem_budgets():
    """(tile_budget_bytes, vmem_limit_bytes), scaled to this chip's VMEM capacity."""
    cap = 64 << 20                      # conservative (v7x-sized) fallback
    try:
        cap = int(pltpu.get_tpu_info().vmem_capacity_bytes) or cap
    except Exception:
        pass
    # ~52% for our double-buffered tiles, ~75% total cap (headroom for compiler scratch).
    return int(cap * 0.52), int(cap * 0.75)


def _choose_tiles(M, D, V, x_it, w_it, out_it, use_argmax, budget):
    """Pick (tm, tn, tk, nk, pad_d) so double-buffered blocks fit the VMEM budget."""
    # sublane packing of the input dtype: f32 -> 8, bf16 -> 16, int8/fp8 -> 32
    sub = 8 if x_it >= 4 else (16 if x_it == 2 else 32)

    # Row tile: balance tiles under a 512 cap (cuts weight re-streaming), sublane-rounded.
    tm_cap = 512
    ni = max(1, _cdiv(M, tm_cap))
    tm = max(sub, _round_up(_cdiv(M, ni), sub))

    def fits(tn, tk, nk):
        w_blk = 2 * tk * tn * w_it                 # double-buffered weight panel (dominant)
        x_blk = 2 * tm * tk * x_it                 # double-buffered x panel
        inter = tm * tn * 4                        # f32 logits block (vreg spill)
        acc = tm * tn * 4 if nk > 1 else 0         # explicit accumulator scratch
        out_blk = (4 * tm * 128 * 4) if use_argmax else (2 * tm * tn * out_it)
        return (w_blk + x_blk + inter + acc + out_blk) <= budget

    # Vocab tile candidates: big MXU-aligned panels, capped at ceil(V/128)*128.
    if V < 128:
        tn_cands = [V]
    else:
        v_cap = _round_up(V, 128)
        tn_cands = sorted({min(t, v_cap) for t in (2048, 1024, 512, 256, 128)},
                          reverse=True)

    # Prefer a single K block (tk == D): no accumulator, fewest grid steps.
    for tn in tn_cands:
        if fits(tn, D, 1):
            return tm, tn, D, 1, False

    # K tiling (huge D): use a 128-multiple tk that divides D exactly -> no weight copy.
    for tk in (2048, 1024, 512, 256, 128):
        if D % tk == 0:
            for tn in tn_cands:
                if fits(tn, tk, D // tk):
                    return tm, tn, tk, D // tk, False

    if D % 128 == 0:
        return tm, tn_cands[-1], 128, D // 128, False

    # TODO(synk): pathological D (huge and not 128-aligned): pad x and w along D once.
    return tm, tn_cands[-1], 512, _cdiv(D, 512), True


# ------------------------- logits (matmul) kernels -------------------------
def _matmul_kernel_single_k(x_ref, w_ref, o_ref):
    # Whole K in one block: write straight to the output tile.
    o_ref[...] = jnp.dot(x_ref[...], w_ref[...],
                         preferred_element_type=jnp.float32).astype(o_ref.dtype)


def _matmul_kernel_multi_k(x_ref, w_ref, o_ref, acc_ref):
    k = pl.program_id(2)

    @pl.when(k == 0)
    def _():
        acc_ref[...] = jnp.zeros_like(acc_ref)

    acc_ref[...] += jnp.dot(x_ref[...], w_ref[...],
                            preferred_element_type=jnp.float32)

    @pl.when(k == pl.num_programs(2) - 1)
    def _():
        o_ref[...] = acc_ref[...].astype(o_ref.dtype)


# --------------------- fused matmul + argmax kernels -----------------------
def _argmax_update(block, col0, v_real, rmax_ref, rarg_ref):
    # block: (tm, tn) f32 logits for global vocab columns [col0, col0 + tn)
    col = col0 + jax.lax.broadcasted_iota(jnp.int32, block.shape, 1)
    block = jnp.where(col < v_real, block, -jnp.inf)   # ragged tail / fully-OOB tiles
    blk_max = jnp.max(block, axis=-1, keepdims=True)
    cand = jnp.where(block == blk_max, col, v_real)    # first col hitting block max
    blk_arg = jnp.min(cand, axis=-1, keepdims=True)
    better = blk_max > rmax_ref[...]                   # strict >: earlier block wins ties
    rarg_ref[...] = jnp.where(better, blk_arg, rarg_ref[...])
    rmax_ref[...] = jnp.maximum(blk_max, rmax_ref[...])


def _make_argmax_kernel_1k(tn, v_real, njs):
    """Single-K fused matmul+argmax; grid = (nsplit, ni, njs); vocab axis is the carry."""
    def kernel(x_ref, w_ref, pmax_ref, parg_ref, rmax_ref, rarg_ref):
        c = pl.program_id(0)
        jj = pl.program_id(2)

        @pl.when(jj == 0)
        def _():
            rmax_ref[...] = jnp.full_like(rmax_ref, -jnp.inf)
            rarg_ref[...] = jnp.zeros_like(rarg_ref)

        block = jnp.dot(x_ref[...], w_ref[...], preferred_element_type=jnp.float32)
        _argmax_update(block, (c * njs + jj) * tn, v_real, rmax_ref, rarg_ref)

        @pl.when(jj == pl.num_programs(2) - 1)
        def _():
            pmax_ref[...] = rmax_ref[...]
            parg_ref[...] = rarg_ref[...]
    return kernel


def _make_argmax_kernel_multik(tn, v_real, nk):
    """K-tiled fused matmul+argmax (rare huge-D fallback); grid = (ni, nj, nk)."""
    def kernel(x_ref, w_ref, idx_ref, acc_ref, rmax_ref, rarg_ref):
        j = pl.program_id(1)
        k = pl.program_id(2)

        @pl.when(jnp.logical_and(j == 0, k == 0))
        def _():
            rmax_ref[...] = jnp.full_like(rmax_ref, -jnp.inf)
            rarg_ref[...] = jnp.zeros_like(rarg_ref)

        @pl.when(k == 0)
        def _():
            acc_ref[...] = jnp.zeros_like(acc_ref)

        acc_ref[...] += jnp.dot(x_ref[...], w_ref[...],
                                preferred_element_type=jnp.float32)

        @pl.when(k == nk - 1)
        def _():
            _argmax_update(acc_ref[...], j * tn, v_real, rmax_ref, rarg_ref)

        @pl.when(jnp.logical_and(j == pl.num_programs(1) - 1, k == nk - 1))
        def _():
            idx_ref[...] = rarg_ref[...]
    return kernel


# ------------------------------ wrapper ------------------------------------
def unembedding_forward(x, unembed_data, use_unembed_argmax):
    D, V = unembed_data.shape
    assert x.shape[-1] == D
    lead = x.shape[:-1]
    M = int(math.prod(lead)) if lead else 1

    out_dtype = jnp.result_type(x.dtype, unembed_data.dtype)
    x2d = x.reshape(M, D)           # native dtype; MXU accumulates in f32
    w = unembed_data                # native dtype; never padded / copied along V

    x_it = jnp.dtype(x2d.dtype).itemsize
    w_it = jnp.dtype(w.dtype).itemsize
    out_it = jnp.dtype(out_dtype).itemsize

    budget, vmem_limit = _vmem_budgets()
    tm, tn, tk, nk, pad_d = _choose_tiles(M, D, V, x_it, w_it, out_it,
                                          use_unembed_argmax, budget)

    if pad_d:
        # Rare fallback: one-time pad of x and w along D only (never along V).
        D_pad = _round_up(D, tk)
        x2d = jnp.pad(x2d, ((0, 0), (0, D_pad - D)))
        w = jnp.pad(w, ((0, D_pad - D), (0, 0)))
        nk = D_pad // tk

    ni = _cdiv(M, tm)
    nj = _cdiv(V, tn)

    def cparams(sem):
        return pltpu.CompilerParams(dimension_semantics=sem,
                                    vmem_limit_bytes=vmem_limit)

    # ------------------------------ logits path ------------------------------
    if not use_unembed_argmax:
        out_shape = jax.ShapeDtypeStruct((M, V), out_dtype)
        if nk == 1:
            # Grid order minimizing HBM traffic (bytes / D):
            #   weight-stationary: x read nj times, w once; x-stationary: x once, w ni times.
            w_stationary = (nj * M * x_it + V * w_it) <= (M * x_it + ni * V * w_it)
            if w_stationary:
                grid = (nj, ni)
                x_spec = pl.BlockSpec((tm, tk), lambda j, i: (i, 0))
                w_spec = pl.BlockSpec((tk, tn), lambda j, i: (0, j))   # held across i
                o_spec = pl.BlockSpec((tm, tn), lambda j, i: (i, j))
            else:
                grid = (ni, nj)
                x_spec = pl.BlockSpec((tm, tk), lambda i, j: (i, 0))   # held across j
                w_spec = pl.BlockSpec((tk, tn), lambda i, j: (0, j))
                o_spec = pl.BlockSpec((tm, tn), lambda i, j: (i, j))
            logits = pl.pallas_call(
                _matmul_kernel_single_k,
                out_shape=out_shape,
                grid_spec=pltpu.PrefetchScalarGridSpec(
                    num_scalar_prefetch=0, grid=grid,
                    in_specs=[x_spec, w_spec], out_specs=o_spec),
                compiler_params=cparams(("parallel", "parallel")),
            )(x2d, w)
        else:
            logits = pl.pallas_call(
                _matmul_kernel_multi_k,
                out_shape=out_shape,
                grid_spec=pltpu.PrefetchScalarGridSpec(
                    num_scalar_prefetch=0, grid=(ni, nj, nk),
                    in_specs=[pl.BlockSpec((tm, tk), lambda i, j, k: (i, k)),
                              pl.BlockSpec((tk, tn), lambda i, j, k: (k, j))],
                    out_specs=pl.BlockSpec((tm, tn), lambda i, j, k: (i, j)),
                    scratch_shapes=[pltpu.VMEM((tm, tn), jnp.float32)]),
                compiler_params=cparams(("parallel", "parallel", "arbitrary")),
            )(x2d, w)
        return logits.reshape(*lead, V)

    # --------------------- fused matmul + argmax path ------------------------
    # Never materializes the (M, V) logits in HBM.
    if nk == 1:
        # Decode case (one row tile): split the vocab across a leading "parallel"
        # axis so both v7x TensorCores stream half the weight; combine partials below.
        nsplit = 2 if (ni == 1 and nj >= 2) else 1
        njs = _cdiv(nj, nsplit)

        def w_map(c, i, jj):
            return (0, jnp.minimum(c * njs + jj, nj - 1))   # clamp fully-OOB split tiles

        pmax, parg = pl.pallas_call(
            _make_argmax_kernel_1k(tn, V, njs),
            out_shape=(jax.ShapeDtypeStruct((nsplit, M, 1), jnp.float32),
                       jax.ShapeDtypeStruct((nsplit, M, 1), jnp.int32)),
            grid_spec=pltpu.PrefetchScalarGridSpec(
                num_scalar_prefetch=0, grid=(nsplit, ni, njs),
                in_specs=[pl.BlockSpec((tm, tk), lambda c, i, jj: (i, 0)),
                          pl.BlockSpec((tk, tn), w_map)],
                out_specs=(pl.BlockSpec((None, tm, 1), lambda c, i, jj: (c, i, 0)),
                           pl.BlockSpec((None, tm, 1), lambda c, i, jj: (c, i, 0))),
                scratch_shapes=[pltpu.VMEM((tm, 1), jnp.float32),
                                pltpu.VMEM((tm, 1), jnp.int32)]),
            compiler_params=cparams(("parallel", "parallel", "arbitrary")),
        )(x2d, w)
        if nsplit == 2:
            # Strict > keeps first-occurrence ties with the lower-column half.
            idx = jnp.where(pmax[1] > pmax[0], parg[1], parg[0])
        else:
            idx = parg[0]
    else:
        idx = pl.pallas_call(
            _make_argmax_kernel_multik(tn, V, nk),
            out_shape=jax.ShapeDtypeStruct((M, 1), jnp.int32),
            grid_spec=pltpu.PrefetchScalarGridSpec(
                num_scalar_prefetch=0, grid=(ni, nj, nk),
                in_specs=[pl.BlockSpec((tm, tk), lambda i, j, k: (i, k)),
                          pl.BlockSpec((tk, tn), lambda i, j, k: (k, j))],
                out_specs=pl.BlockSpec((tm, 1), lambda i, j, k: (i, 0)),
                scratch_shapes=[pltpu.VMEM((tm, tn), jnp.float32),
                                pltpu.VMEM((tm, 1), jnp.float32),
                                pltpu.VMEM((tm, 1), jnp.int32)]),
            compiler_params=cparams(("parallel", "arbitrary", "arbitrary")),
        )(x2d, w)
    return idx.reshape(*lead)


if __name__ == "__main__":
    key = jax.random.PRNGKey(0)
    kx, kw, kx2, kw2, kx3, kw3 = jax.random.split(key, 6)

    # Small shapes consistent with the module: x (batch, seq, hidden), weight (hidden, vocab).
    B, S, D, V = 2, 8, 32, 256
    x = jax.random.normal(kx, (B, S, D), dtype=jnp.float32)
    unembed_data = jax.random.normal(kw, (D, V), dtype=jnp.float32)
    ref_logits = x @ unembed_data

    logits = jax.block_until_ready(
        unembedding_forward(x, unembed_data, use_unembed_argmax=False))
    np.testing.assert_allclose(np.asarray(logits), np.asarray(ref_logits),
                               rtol=1e-5, atol=1e-5)

    idx = jax.block_until_ready(
        unembedding_forward(x, unembed_data, use_unembed_argmax=True))
    np.testing.assert_array_equal(
        np.asarray(idx), np.asarray(jnp.argmax(ref_logits, axis=-1).astype(jnp.int32)))

    # Non-128-multiple vocab with all-negative logits: exercises ragged-tail masking.
    V2 = 200
    x2 = jnp.abs(jax.random.normal(kx2, (B, S, D), dtype=jnp.float32)) + 0.1
    w2 = -jnp.abs(jax.random.normal(kw2, (D, V2), dtype=jnp.float32)) - 0.1
    ref2 = x2 @ w2
    logits2 = jax.block_until_ready(
        unembedding_forward(x2, w2, use_unembed_argmax=False))
    np.testing.assert_allclose(np.asarray(logits2), np.asarray(ref2),
                               rtol=1e-5, atol=1e-5)
    idx2 = jax.block_until_ready(
        unembedding_forward(x2, w2, use_unembed_argmax=True))
    np.testing.assert_array_equal(
        np.asarray(idx2), np.asarray(jnp.argmax(ref2, axis=-1).astype(jnp.int32)))

    # Vocab spanning multiple tiles with a ragged tail: exercises the 2-way vocab
    # split + partial-argmax combine and multi-panel weight streaming.
    V3 = 2304
    x3 = jax.random.normal(kx3, (B, S, D), dtype=jnp.float32)
    w3 = jax.random.normal(kw3, (D, V3), dtype=jnp.float32)
    ref3 = x3 @ w3
    logits3 = jax.block_until_ready(
        unembedding_forward(x3, w3, use_unembed_argmax=False))
    np.testing.assert_allclose(np.asarray(logits3), np.asarray(ref3),
                               rtol=1e-5, atol=1e-5)
    idx3 = jax.block_until_ready(
        unembedding_forward(x3, w3, use_unembed_argmax=True))
    np.testing.assert_array_equal(
        np.asarray(idx3), np.asarray(jnp.argmax(ref3, axis=-1).astype(jnp.int32)))

    print("KERNEL_OK")
</pallas_src>

<mosaic_0001>
module attributes {stable_mosaic.version = 11 : i64} {
  func.func @_matmul_kernel_single_k(%arg0: i32, %arg1: i32, %arg2: memref<16x32xf32, #tpu.memory_space<vmem>>, %arg3: memref<32x256xf32, #tpu.memory_space<vmem>>, %arg4: memref<16x256xf32, #tpu.memory_space<vmem>>) attributes {dimension_semantics = [#tpu.dimension_semantics<parallel>, #tpu.dimension_semantics<parallel>], iteration_bounds = array<i64: 1, 1>, scalar_prefetch = 0 : i64, scratch_operands = 0 : i64, tpu.core_type = #tpu.core_type<tc>, window_params = [{transform_indices = @transform_0, window_bounds = array<i64: 16, 32>}, {transform_indices = @transform_1, window_bounds = array<i64: 32, 256>}, {transform_indices = @transform_2, window_bounds = array<i64: 16, 256>}]} {
    %c0 = arith.constant 0 : index
    %c0_0 = arith.constant 0 : index
    %0 = vector.load %arg2[%c0, %c0_0] : memref<16x32xf32, #tpu.memory_space<vmem>>, vector<16x32xf32>
    %c0_1 = arith.constant 0 : index
    %c0_2 = arith.constant 0 : index
    %1 = vector.load %arg3[%c0_1, %c0_2] : memref<32x256xf32, #tpu.memory_space<vmem>>, vector<32x256xf32>
    %cst = arith.constant dense<0.000000e+00> : vector<16x256xf32>
    %2 = tpu.matmul %0, %1, %cst {dimension_numbers = #tpu.dot_dimension_numbers<[1], [0], [0], [1], [0, 0, 1, 1], [], []>} : vector<16x32xf32>, vector<32x256xf32>, vector<16x256xf32> -> vector<16x256xf32>
    %c0_3 = arith.constant 0 : index
    %c0_4 = arith.constant 0 : index
    %3 = vector.load %arg4[%c0_3, %c0_4] : memref<16x256xf32, #tpu.memory_space<vmem>>, vector<16x256xf32>
    tpu.vector_store %arg4[%c0_3, %c0_4], %2 {strides = array<i32>} : memref<16x256xf32, #tpu.memory_space<vmem>>, vector<16x256xf32>,
    return
  }
  func.func @transform_0(%arg0: i32, %arg1: i32) -> (i32, i32) {
    %c0_i32 = arith.constant 0 : i32
    %c0_i32_0 = arith.constant 0 : i32
    return %arg1, %c0_i32 : i32, i32
  }
  func.func @transform_1(%arg0: i32, %arg1: i32) -> (i32, i32) {
    %c0_i32 = arith.constant 0 : i32
    %c0_i32_0 = arith.constant 0 : i32
    return %c0_i32, %arg0 : i32, i32
  }
  func.func @transform_2(%arg0: i32, %arg1: i32) -> (i32, i32) {
    %c0_i32 = arith.constant 0 : i32
    return %arg1, %arg0 : i32, i32
  }
}

</mosaic_0001>

<bundles_post_ra>
// kernel: tpu_custom_call.1
= control target key start
LH: loop header
LB: loop body
LE: loop exit
PB: predicated region body
PF: predicated region fallthrough
CT: control target
= control target key end

     0   :  { %7 = vsyncpa [#allocation3], 0  ;;  %s315_s0 = inlined_call_operand.hbm [shape: f32[16,32], index: 0, kind: input, shape index: {}]   ;;  %s316_s1 = inlined_call_operand.hbm [shape: f32[32,256], index: 1, kind: input, shape index: {}]   ;;  %s317_s2 = inlined_call_operand.hbm [shape: f32[16,256], index: 2, kind: output, shape index: {}]  }
   0x1   :  { %8 = vsyncpa [#allocation6], 0 }
   0x2   :  { %9 = vsyncpa [#allocation4], 0  ;;  %s250_s9 = smov [#allocation2]   ;;  %s178_s13 = scalar_lea.hbm %s315_s0, 256 }
   0x3   :  { %s15_s10 = sshll.u32 %s250_s9, 4  ;;  %p179_p0 = scmp.ne.s32.totalorder %s315_s0, %s178_s13  ;;  %s16_s10 = int_to_ptr.vmem [resolvable:$true] %s15_s10 }
   0x4   :  { %p182_p1 = scmp.lt.u32.totalorder %s178_s13, %s315_s0 }
   0x6   :  { %p184_p2 = pnand %p182_p1, %p179_p0 }
   0x8   :  { %187 = shalt.err (!%p184_p2)
}
   0x9   :  { %s188_s18 = scalar_lea.vmem %s16_s10, 256  ;;  %p193_p4 = scmp.lt.s32.totalorder %s16_s10, %s16_s10 }
   0xa   :  { %p189_p3 = scmp.ne.s32.totalorder %s16_s10, %s188_s18  ;;  %p194_p5 = scmp.lt.s32.totalorder %s188_s18, %s188_s18 }
   0xc   :  { %p195_p6 = por %p194_p5, %p193_p4 }
   0xe   :  { %p196_p7 = pnand %p195_p6, %p189_p3 }
  0x10   :  { %199 = shalt.err (!%p196_p7)
}
  0x11   :  { %s251_s19 = smov 128   ;;  %s252_s20 = smov 8  }
  0x12   :  { %21 = dma.hbm_to_vmem [thread:$0]  %s315_s0, 256, %s16_s10, [#allocation3], %s251_s19, %s251_s19, %s252_s20  }
  0x13   :  { %s253_s23 = smov [#allocation5]   ;;  %s200_s27 = scalar_lea.hbm %s316_s1, 1024 }
  0x14   :  { %s27_s24 = sshll.u32 %s253_s23, 4  ;;  %p201_p8 = scmp.ne.s32.totalorder %s316_s1, %s200_s27  ;;  %s28_s24 = int_to_ptr.vmem [resolvable:$true] %s27_s24 }
  0x15   :  { %p204_p9 = scmp.lt.u32.totalorder %s200_s27, %s316_s1 }
  0x17   :  { %p206_p10 = pnand %p204_p9, %p201_p8 }
  0x19   :  { %209 = shalt.err (!%p206_p10)
}
  0x1a   :  { %s210_s4 = scalar_lea.vmem %s28_s24, 1024  ;;  %p215_p12 = scmp.lt.s32.totalorder %s28_s24, %s28_s24 }
  0x1b   :  { %p211_p11 = scmp.ne.s32.totalorder %s28_s24, %s210_s4  ;;  %p216_p13 = scmp.lt.s32.totalorder %s210_s4, %s210_s4 }
  0x1d   :  { %p217_p0 = por %p216_p13, %p215_p12 }
  0x1f   :  { %p218_p1 = pnand %p217_p0, %p211_p11 }
  0x21   :  { %221 = shalt.err (!%p218_p1)
}
  0x22   :  { %s254_s0 = smov 256   ;;  %s255_s5 = smov 16  }
  0x23   :  { %33 = dma.hbm_to_vmem [thread:$0]  %s316_s1, 1024, %s28_s24, [#allocation6], %s254_s0, %s254_s0, %s255_s5  }
  0x24   :  { %244 = dma.done.wait [#allocation3], 256  }
  0x25   :  { %245 = vsyncadd [#allocation3], 4294967040 }
  0x26   :  { %246 = dma.done.wait [#allocation6], 1024  }
  0x27   :  { %247 = vsyncadd [#allocation6], 4294966272  ;;  %v256_v0 = vmov 0.0   ;;  %v43_v1 = vld [vmem:[#allocation5 + $0x8] sm:$0xff]  ;;  %v45_v2 = vld [vmem:[#allocation5 + $0x18] sm:$0xff]  ;;  %vm50_vm0 = vcmask 261120  }
  0x28   :  { %121 = vmatprep.mubr.f32.mxu0 %v256_v0  ;;  %127 = vmatprep.mubr.f32.mxu1 %v256_v0  ;;  %v42_v3 = vld [vmem:[#allocation5] sm:$0xff]  ;;  %v158_v4 = vpack.c.bf16 %v45_v2, %v43_v1  ;;  %v44_v5 = vld [vmem:[#allocation5 + $0x10] sm:$0xff]  ;;  %v47_v6 = vld [vmem:[#allocation5 + $0x28] sm:$0xff]  ;;  %s257_s1 = smov [#allocation7]  }
  0x29   :  { %v49_v7 = vld [vmem:[#allocation5 + $0x38] sm:$0xff]  ;;  %v160_v8 = vpack.c.bf16 %v44_v5, %v42_v3  ;;  %v46_v10 = vld [vmem:[#allocation5 + $0x20] sm:$0xff]  ;;  %v48_v11 = vld [vmem:[#allocation5 + $0x30] sm:$0xff]  ;;  %s143_s8 = sshll.u32 %s257_s1, 4  ;;  %s144_s8 = int_to_ptr.vmem [resolvable:$true] %s143_s8 }
  0x2a   :  { %v162_v9 = vpack.c.bf16 %v49_v7, %v47_v6  ;;  %159 = vmatprep.subr.bf16.mxu0 %v158_v4  ;;  %166 = vmatprep.subr.bf16.mxu1 %v158_v4  ;;  %v164_v12 = vpack.c.bf16 %v48_v11, %v46_v10  ;;  %v40_v13 = vld [vmem:[#allocation2] sm:$0xff]  ;;  %v41_v14 = vld [vmem:[#allocation2 + $0x8] sm:$0xff]  ;;  %s222_s9 = scalar_lea.vmem %s144_s8, 512  ;;  %p227_p3 = scmp.lt.s32.totalorder %s144_s8, %s144_s8 }
  0x2b   :  { %161 = vmatpush1.bf16.msra.mxu0 %v160_v8  ;;  %168 = vmatpush1.bf16.msra.mxu1 %v160_v8  ;;  %p223_p2 = scmp.ne.s32.totalorder %s144_s8, %s222_s9  ;;  %p228_p4 = scmp.lt.s32.totalorder %s222_s9, %s222_s9 }
  0x2c   :  { %163 = vmatprep.subr.bf16.mxu0 %v162_v9  ;;  %167 = vmatprep.subr.bf16.mxu1 %v162_v9 }
  0x2d   :  { %p229_p5 = por %p228_p4, %p227_p3 }
  0x2f   :  { %165 = vmatpush1.bf16.msra.mxu0 %v164_v12  ;;  %169 = vmatpush1.bf16.msra.mxu1 %v164_v12  ;;  %p230_p6 = pnand %p229_p5, %p223_p2 }
  0x32   :  { %156 = vmatmul.mubr.msk.f32.vlgmr.msra.gmra.mrb[0].mxu0 %vm50_vm0, %v40_v13  ;;  %157 = vmatmul.mubr.msk.f32.vlgmr.msra.gmra.mrb[0].mxu1 %vm50_vm0, %v41_v14 }
 0x105   :  { %v123_v15 = vpop.f32.mrb[0].mxu0  ;;  %v129_v16 = vpop.f32.mrb[0].mxu1 }
 0x106   :  { %134 = vst [vmem:[#allocation7] sm:$0xff] %v123_v15  ;;  %136 = vst [vmem:[#allocation7 + $0x10] sm:$0xff] %v129_v16  ;;  %v125_v17 = vpop.f32.mrb[1].mxu0  ;;  %v131_v18 = vpop.f32.mrb[1].mxu1 }
 0x107   :  { %135 = vst [vmem:[#allocation7 + $0x8] sm:$0xff] %v125_v17  ;;  %137 = vst [vmem:[#allocation7 + $0x18] sm:$0xff] %v131_v18 }
 0x108   :  { %233 = shalt.err (!%p230_p6)
}
 0x109   :  { %s234_s12 = scalar_lea.hbm %s317_s2, 512 }
 0x10a   :  { %p235_p7 = scmp.ne.s32.totalorder %s317_s2, %s234_s12  ;;  %p238_p8 = scmp.lt.u32.totalorder %s234_s12, %s317_s2 }
 0x10c   :  { %p240_p9 = pnand %p238_p8, %p235_p7 }
 0x10e   :  { %243 = shalt.err (!%p240_p9)
}
 0x10f   :  { %149 = dma.vmem_to_hbm [thread:$0]  %s144_s8, 512, %s317_s2, [#allocation4], %s254_s0, %s254_s0, %s255_s5  }
 0x110   :  { %248 = dma.done.wait [#allocation4], 512  }
 0x111   :  { %249 = vsyncadd [#allocation4], 4294966784 }
 0x112   :  { %153 = vsyncpa [#allocation3], 1 }
 0x113   :  { %154 = vsyncpa [#allocation6], 1 }
 0x114   :  { %155 = vsyncpa [#allocation4], 1 }

</bundles_post_ra>
